<compile_context>
chip_gen: v5e
topology: v5e:2x2
jax: 0.10.0
libtpu: 0.0.40
codegen_flags: <defaults>
</compile_context>

<pallas_src>
import functools

import jax
import jax.numpy as jnp
from jax.experimental import pallas as pl
from jax.experimental.pallas import tpu as pltpu


def _round_up(x, m):
    return ((x + m - 1) // m) * m


def _sharpe_tile_kernel(w_ref, r_ref, part_ref, *, n_valid, block_b, batch_axis):
    """One batch tile: emit (n, sum, M2) partial statistics for that tile.

    w_ref / r_ref : the tile, either [block_b, A] (batch_axis=0, natural
                    layout) or [A, block_b] (batch_axis=1, asset-major layout
                    for tiny A).
    part_ref      : (1, 8, 128) f32 output slab for this grid step.
                    sublane 0 -> n_b, sublane 1 -> sum_b, sublane 2 -> M2_b.
    """
    i = pl.program_id(0)
    asset_axis = 1 - batch_axis

    w = w_ref[...].astype(jnp.float32)
    r = r_ref[...].astype(jnp.float32)

    # Per-sample portfolio return (reduce the asset axis).  Pure VPU/XLU work,
    # hidden under the input DMA.
    port = jnp.sum(w * r, axis=asset_axis, keepdims=True)

    # Mask rows past the end of the batch (only the last, ragged tile has any).
    idx = jax.lax.broadcasted_iota(jnp.int32, port.shape, dimension=batch_axis)
    valid = (i * block_b + idx) < n_valid
    port = jnp.where(valid, port, 0.0)

    # Tile statistics, shifted by the tile mean (numerically stable M2).
    n_b = jnp.minimum(block_b, n_valid - i * block_b).astype(jnp.float32)
    tile_sum = jnp.sum(port)
    tile_mean = tile_sum / n_b
    centered = jnp.where(valid, port - tile_mean, 0.0)
    tile_m2 = jnp.sum(centered * centered)

    # Write the partials into this step's own (8, 128) slab (lane-dense store).
    sub = jax.lax.broadcasted_iota(jnp.int32, (8, 128), 0)
    out_tile = jnp.where(sub == 0, n_b,
               jnp.where(sub == 1, tile_sum,
               jnp.where(sub == 2, tile_m2, 0.0)))
    part_ref[0] = out_tile


def sharpe_ratio_loss(pred_weights, actual_returns,
                      risk_free_rate=0.0, annualization_factor=252,
                      vmem_budget_bytes=24 * 1024 * 1024):
    # Match the PyTorch module's column truncation of actual_returns.
    if actual_returns.shape[1] > pred_weights.shape[1]:
        actual_returns = actual_returns[:, : pred_weights.shape[1]]

    B, A = pred_weights.shape
    itemsize = max(jnp.dtype(pred_weights.dtype).itemsize,
                   jnp.dtype(actual_returns.dtype).itemsize)
    sub_pack = 8 * max(1, 4 // itemsize)   # sublane packing: f32->8, bf16->16, i8->32

    # Layout choice (perf review): natural [B, A] for A >= 64 (no transpose at
    # all, assets on lanes); a single asset-major layout pass only for tiny A
    # so the vregs stay lane-dense.
    asset_major = A < 64
    if asset_major:
        w_in = jnp.swapaxes(pred_weights, 0, 1)    # [A, B]
        r_in = jnp.swapaxes(actual_returns, 0, 1)  # [A, B]
        fixed_bytes_per_batch = _round_up(A, sub_pack) * itemsize  # per lane column
        batch_granule = 128                         # batch sits on the lane axis
        batch_axis = 1
    else:
        w_in = pred_weights                         # [B, A]
        r_in = actual_returns                       # [B, A]
        fixed_bytes_per_batch = _round_up(A, 128) * itemsize       # per sublane row
        batch_granule = sub_pack                    # batch sits on the sublane axis
        batch_axis = 0

    # Tile sizing: 2 inputs x 2 pipeline buffers, accounting for the VMEM
    # (sublane, 128-lane) tile padding of the block.
    max_bb = (vmem_budget_bytes // (4 * fixed_bytes_per_batch))
    max_bb = max(batch_granule, (max_bb // batch_granule) * batch_granule)
    if B <= max_bb:
        block_b = B            # single block == full batch dim (always legal)
    else:
        block_b = max_bb       # multiple of the granule; last tile ragged + masked

    num_tiles = (B + block_b - 1) // block_b

    if asset_major:
        in_block = (A, block_b)
        in_map = lambda i: (0, i)
    else:
        in_block = (block_b, A)
        in_map = lambda i: (i, 0)

    kernel = functools.partial(
        _sharpe_tile_kernel,
        n_valid=B,
        block_b=block_b,
        batch_axis=batch_axis,
    )

    cost = pl.CostEstimate(
        flops=3 * B * A,
        transcendentals=0,
        bytes_accessed=2 * B * A * itemsize + num_tiles * 8 * 128 * 4,
    )

    partials = pl.pallas_call(
        kernel,
        out_shape=jax.ShapeDtypeStruct((num_tiles, 8, 128), jnp.float32),
        grid=(num_tiles,),
        in_specs=[
            pl.BlockSpec(in_block, in_map),
            pl.BlockSpec(in_block, in_map),
        ],
        out_specs=pl.BlockSpec((1, 8, 128), lambda i: (i, 0, 0)),
        compiler_params=pltpu.CompilerParams(
            # No carried state across grid steps -> batch axis is parallel
            # (2-TC sharding on v7x, neutral on v5e/v6e).
            dimension_semantics=("parallel",),
            vmem_limit_bytes=48 * 1024 * 1024,
        ),
        cost_estimate=cost,
    )(w_in, r_in)

    # Exact pooled-variance (Chan) combine of the per-tile partials in plain
    # JAX (num_tiles scalars -> negligible).
    n_i = partials[:, 0, 0]
    s_i = partials[:, 1, 0]
    m2_i = partials[:, 2, 0]
    n = jnp.sum(n_i)
    mean = jnp.sum(s_i) / n
    mean_i = s_i / n_i
    m2 = jnp.sum(m2_i + n_i * jnp.square(mean_i - mean))

    # torch.std() is unbiased (ddof=1); B == 1 yields NaN, same as torch.
    var = m2 / (n - 1.0)
    std = jnp.sqrt(var) + 1e-6
    sharpe = (mean - jnp.float32(risk_free_rate)) / std
    sharpe = sharpe * jnp.sqrt(jnp.float32(annualization_factor))
    return -sharpe


def _reference_loss(w, r, risk_free_rate=0.0, annualization_factor=252.0):
    if r.shape[1] > w.shape[1]:
        r = r[:, : w.shape[1]]
    port = jnp.sum(w * r, axis=1)
    mean = port.mean()
    std = jnp.std(port, ddof=1) + 1e-6
    return -((mean - risk_free_rate) / std * jnp.sqrt(annualization_factor))


if __name__ == "__main__":
    key = jax.random.PRNGKey(0)

    # Case 1: tiny shapes, asset-major path, single tile.
    # Case 2: asset-major path with a tiny VMEM budget -> multiple tiles,
    #         ragged last tile (exercises the mask + JAX combine).
    # Case 3: A = 128 -> natural [B, A] path (no transpose), multiple tiles,
    #         ragged last tile.
    cases = [
        dict(batch=8,   assets=16,  budget=None),
        dict(batch=300, assets=16,  budget=32 * 1024),
        dict(batch=200, assets=128, budget=64 * 1024),
    ]

    for idx, c in enumerate(cases):
        k1, k2 = jax.random.split(jax.random.fold_in(key, idx))
        logits = jax.random.normal(k1, (c["batch"], c["assets"]), jnp.float32)
        pred_weights = jax.nn.softmax(logits, axis=1)
        actual_returns = 0.01 * jax.random.normal(
            k2, (c["batch"], c["assets"]), jnp.float32)

        kwargs = {} if c["budget"] is None else dict(vmem_budget_bytes=c["budget"])
        loss = jax.block_until_ready(
            sharpe_ratio_loss(pred_weights, actual_returns, **kwargs))
        ref = _reference_loss(pred_weights, actual_returns)
        assert jnp.allclose(loss, ref, rtol=1e-4, atol=1e-5), (idx, loss, ref)

    print("KERNEL_OK")
</pallas_src>

<mosaic_0001>
module attributes {stable_mosaic.version = 11 : i64} {
  func.func @_sharpe_tile_kernel(%arg0: i32, %arg1: memref<16x8xf32, #tpu.memory_space<vmem>>, %arg2: memref<16x8xf32, #tpu.memory_space<vmem>>, %arg3: memref<1x8x128xf32, #tpu.memory_space<vmem>>) attributes {dimension_semantics = [#tpu.dimension_semantics<parallel>], iteration_bounds = array<i64: 1>, scalar_prefetch = 0 : i64, scratch_operands = 0 : i64, tpu.core_type = #tpu.core_type<tc>, window_params = [{transform_indices = @transform_0, window_bounds = array<i64: 16, 8>}, {transform_indices = @transform_1, window_bounds = array<i64: 16, 8>}, {transform_indices = @transform_2, window_bounds = array<i64: 1, 8, 128>}]} {
    %c0 = arith.constant 0 : index
    %c0_0 = arith.constant 0 : index
    %0 = vector.load %arg1[%c0, %c0_0] : memref<16x8xf32, #tpu.memory_space<vmem>>, vector<16x8xf32>
    %c0_1 = arith.constant 0 : index
    %c0_2 = arith.constant 0 : index
    %1 = vector.load %arg2[%c0_1, %c0_2] : memref<16x8xf32, #tpu.memory_space<vmem>>, vector<16x8xf32>
    %2 = arith.mulf %0, %1 : vector<16x8xf32>
    %cst = arith.constant dense<0.000000e+00> : vector<8xf32>
    %3 = vector.multi_reduction <add>, %2, %cst [0] : vector<16x8xf32> to vector<8xf32>
    %4 = vector.shape_cast %3 : vector<8xf32> to vector<1x8xf32>
    %5 = tpu.iota {dimensions = array<i32: 1>} : vector<1x8xi32>
    %c8_i32 = arith.constant 8 : i32
    %6 = arith.muli %arg0, %c8_i32 : i32
    %7 = vector.broadcast %6 : i32 to vector<1x8xi32>
    %8 = arith.addi %7, %5 : vector<1x8xi32>
    %c8_i32_3 = arith.constant 8 : i32
    %9 = vector.broadcast %c8_i32_3 : i32 to vector<1x8xi32>
    %10 = arith.cmpi slt, %8, %9 : vector<1x8xi32>
    %cst_4 = arith.constant 0.000000e+00 : f32
    %11 = vector.broadcast %cst_4 : f32 to vector<1x8xf32>
    %12 = arith.select %10, %4, %11 : vector<1x8xi1>, vector<1x8xf32>
    %c8_i32_5 = arith.constant 8 : i32
    %13 = arith.muli %arg0, %c8_i32_5 : i32
    %c8_i32_6 = arith.constant 8 : i32
    %14 = arith.subi %c8_i32_6, %13 : i32
    %c8_i32_7 = arith.constant 8 : i32
    %15 = arith.minsi %c8_i32_7, %14 : i32
    %16 = arith.sitofp %15 : i32 to f32
    %17 = vector.shape_cast %12 : vector<1x8xf32> to vector<1x1x8xf32>
    %cst_8 = arith.constant dense<0.000000e+00> : vector<1xf32>
    %18 = vector.multi_reduction <add>, %17, %cst_8 [1, 2] : vector<1x1x8xf32> to vector<1xf32>
    %19 = vector.shape_cast %18 : vector<1xf32> to vector<1x1x1xf32>
    %20 = vector.extract %19[0, 0, 0] : f32 from vector<1x1x1xf32>
    %21 = arith.divf %20, %16 : f32
    %22 = vector.broadcast %21 : f32 to vector<1x8xf32>
    %23 = arith.subf %12, %22 : vector<1x8xf32>
    %cst_9 = arith.constant 0.000000e+00 : f32
    %24 = vector.broadcast %cst_9 : f32 to vector<1x8xf32>
    %25 = arith.select %10, %23, %24 : vector<1x8xi1>, vector<1x8xf32>
    %26 = arith.mulf %25, %25 : vector<1x8xf32>
    %27 = vector.shape_cast %26 : vector<1x8xf32> to vector<1x1x8xf32>
    %cst_10 = arith.constant dense<0.000000e+00> : vector<1xf32>
    %28 = vector.multi_reduction <add>, %27, %cst_10 [1, 2] : vector<1x1x8xf32> to vector<1xf32>
    %29 = vector.shape_cast %28 : vector<1xf32> to vector<1x1x1xf32>
    %30 = vector.extract %29[0, 0, 0] : f32 from vector<1x1x1xf32>
    %31 = tpu.iota {dimensions = array<i32: 0>} : vector<8x128xi32>
    %c0_i32 = arith.constant 0 : i32
    %32 = vector.broadcast %c0_i32 : i32 to vector<8x128xi32>
    %33 = arith.cmpi eq, %31, %32 : vector<8x128xi32>
    %c1_i32 = arith.constant 1 : i32
    %34 = vector.broadcast %c1_i32 : i32 to vector<8x128xi32>
    %35 = arith.cmpi eq, %31, %34 : vector<8x128xi32>
    %c2_i32 = arith.constant 2 : i32
    %36 = vector.broadcast %c2_i32 : i32 to vector<8x128xi32>
    %37 = arith.cmpi eq, %31, %36 : vector<8x128xi32>
    %cst_11 = arith.constant 0.000000e+00 : f32
    %38 = vector.broadcast %30 : f32 to vector<8x128xf32>
    %39 = vector.broadcast %cst_11 : f32 to vector<8x128xf32>
    %40 = arith.select %37, %38, %39 : vector<8x128xi1>, vector<8x128xf32>
    %41 = vector.broadcast %20 : f32 to vector<8x128xf32>
    %42 = arith.select %35, %41, %40 : vector<8x128xi1>, vector<8x128xf32>
    %43 = vector.broadcast %16 : f32 to vector<8x128xf32>
    %44 = arith.select %33, %43, %42 : vector<8x128xi1>, vector<8x128xf32>
    %c0_12 = arith.constant 0 : index
    %c0_13 = arith.constant 0 : index
    %c0_14 = arith.constant 0 : index
    %45 = vector.load %arg3[%c0_12, %c0_13, %c0_14] : memref<1x8x128xf32, #tpu.memory_space<vmem>>, vector<1x8x128xf32>
    %46 = vector.shape_cast %45 : vector<1x8x128xf32> to vector<8x128xf32>
    %47 = vector.shape_cast %44 : vector<8x128xf32> to vector<1x8x128xf32>
    tpu.vector_store %arg3[%c0_12, %c0_13, %c0_14], %47 {strides = array<i32>} : memref<1x8x128xf32, #tpu.memory_space<vmem>>, vector<1x8x128xf32>,
    return
  }
  func.func @transform_0(%arg0: i32) -> (i32, i32) {
    %c0_i32 = arith.constant 0 : i32
    %c0_i32_0 = arith.constant 0 : i32
    return %c0_i32, %arg0 : i32, i32
  }
  func.func @transform_1(%arg0: i32) -> (i32, i32) {
    %c0_i32 = arith.constant 0 : i32
    %c0_i32_0 = arith.constant 0 : i32
    return %c0_i32, %arg0 : i32, i32
  }
  func.func @transform_2(%arg0: i32) -> (i32, i32, i32) {
    %c0_i32 = arith.constant 0 : i32
    %c0_i32_0 = arith.constant 0 : i32
    %c0_i32_1 = arith.constant 0 : i32
    return %arg0, %c0_i32, %c0_i32_0 : i32, i32, i32
  }
}

</mosaic_0001>

<bundles_post_ra>
// kernel: tpu_custom_call.1
= control target key start
LH: loop header
LB: loop body
LE: loop exit
PB: predicated region body
PF: predicated region fallthrough
CT: control target
= control target key end

     0   :  { %vm18_vm0 = vcmask 64512   ;;  %s181_s0 = inlined_call_operand.vmem [shape: f32[16,8], index: 0, kind: input, shape index: {}]   ;;  %s182_s1 = inlined_call_operand.vmem [shape: f32[16,8], index: 1, kind: input, shape index: {}]   ;;  %s183_s2 = inlined_call_operand.hbm [shape: f32[1,8,128], index: 2, kind: output, shape index: {}]  }
   0x1   :  { %v12_v0 = vld [vmem:[%s181_s0] sm:$0xff]  ;;  %v13_v1 = vld [vmem:[%s181_s0 + $0x8] sm:$0xff] }
   0x2   :  { %v14_v2 = vld [vmem:[%s182_s1] sm:$0xff]  ;;  %v15_v3 = vld [vmem:[%s182_s1 + $0x8] sm:$0xff] }
   0x3   :  { %v16_v4 = vmul.f32 %v14_v2, %v12_v0 }
   0x4   :  { %7 = vsyncpa [#allocation3], 0  ;;  %v17_v5 = vmul.f32 %v15_v3, %v13_v1  ;;  %v28_v10 = vlaneseq  ;;  %vm39_vm2 = vcmask 57344   ;;  %v145_v19 = vmov 8.0   ;;  %s146_s18 = smov [#allocation2]   ;;  %s100_s23 = sshll.u32 %s183_s2, 4  ;;  %s101_s23 = int_to_ptr.hbm [resolvable:$true] %s100_s23 }
   0x5   :  { %v19_v6 = vsel %vm18_vm0, %v16_v4, 0.0  ;;  %117 = vrcp.f32 %v145_v19  ;;  %s98_s19 = sshll.u32 %s146_s18, 4  ;;  %s99_s19 = int_to_ptr.vmem [resolvable:$true] %s98_s19 }
   0x6   :  { %v20_v7 = vsel %vm18_vm0, %v17_v5, 0.0  ;;  %v29_v13 = vand.u32 127, %v28_v10  ;;  %v82_v45 = vshrl.u32 %v28_v10, 7 }
   0x7   :  { %v21_v8 = vadd.f32 %v20_v7, %v19_v6 }
   0x8   :  { %vm33_vm1 = vcmp.lt.s32.totalorder %v29_v13, 8  ;;  %vm85_vm4 = vcmp.eq.s32.totalorder %v82_v45, 2  ;;  %vm84_vm5 = vcmp.eq.s32.totalorder %v82_v45, 1  ;;  %vm83_vm6 = vcmp.eq.s32.totalorder %v82_v45, 0 }
   0x9   :  { %v22_v9 = vrot.slane %v21_v8, 4 }
   0xb   :  { %v23_v11 = vadd.f32 %v22_v9, %v21_v8  ;;  %v118_v20 = vpop.eup %117 }
   0xc   :  { %v52_v21 = vmul.f32 8.0, %v118_v20  ;;  %vm57_vm3 = vweird.f32 %v118_v20 }
   0xd   :  { %v24_v12 = vrot.slane %v23_v11, 2 }
   0xe   :  { %v53_v22 = vsub.f32 1.0, %v52_v21 }
   0xf   :  { %v25_v14 = vadd.f32 %v24_v12, %v23_v11 }
  0x10   :  { %v54_v26 = vmul.f32 %v118_v20, %v53_v22 }
  0x11   :  { %v26_v15 = vrot.slane %v25_v14, 1 }
  0x12   :  { %v55_v29 = vadd.f32 %v118_v20, %v54_v26 }
  0x13   :  { %v27_v16 = vadd.f32 %v26_v15, %v25_v14 }
  0x14   :  { %v59_v32 = vsel %vm57_vm3, %v118_v20, %v55_v29 }
  0x15   :  { %v34_v17 = vsel %vm33_vm1, %v27_v16, 0.0 }
  0x16   :  { %v40_v18 = vsel %vm39_vm2, %v34_v17, 0.0 }
  0x17   :  { %41 = vadd.xlane.f32.xlu0 %v40_v18 }
  0x8a   :  { %v42_v23 = vpop.xlane.xlu0 %41 }
  0x8b   :  { %v43_v24 = vrot.slane %v42_v23, 4 }
  0x8d   :  { %v44_v25 = vadd.f32 %v43_v24, %v42_v23 }
  0x8f   :  { %v45_v27 = vrot.slane %v44_v25, 2 }
  0x91   :  { %v46_v28 = vadd.f32 %v45_v27, %v44_v25 }
  0x93   :  { %v47_v30 = vrot.slane %v46_v28, 1 }
  0x95   :  { %v48_v31 = vadd.f32 %v47_v30, %v46_v28 }
  0x97   :  { %109 = vpush %v48_v31 }
  0x98   :  { %111 = vpush %v59_v32 }
  0xc8   :  { %s110_s0 = spop %109 }
  0xc9   :  { %s112_s1 = spop %111  ;;  %v88_v47 = vstv %s110_s0 }
  0xca   :  { %s66_s17 = smul.f32 %s112_s1, %s110_s0 }
  0xcc   :  { %v67_v33 = vstv %s66_s17 }
  0xcd   :  { %v68_v34 = vsub.f32 %v34_v17, %v67_v33 }
  0xcf   :  { %v69_v35 = vsel %vm33_vm1, %v68_v34, 0.0 }
  0xd0   :  { %v70_v36 = vmul.f32 %v69_v35, %v69_v35 }
  0xd2   :  { %v71_v37 = vsel %vm39_vm2, %v70_v36, 0.0 }
  0xd3   :  { %72 = vadd.xlane.f32.xlu0 %v71_v37 }
 0x146   :  { %v73_v38 = vpop.xlane.xlu0 %72 }
 0x147   :  { %v74_v39 = vrot.slane %v73_v38, 4 }
 0x149   :  { %v75_v40 = vadd.f32 %v74_v39, %v73_v38 }
 0x14b   :  { %v76_v41 = vrot.slane %v75_v40, 2 }
 0x14d   :  { %v77_v42 = vadd.f32 %v76_v41, %v75_v40 }
 0x14f   :  { %v78_v43 = vrot.slane %v77_v42, 1 }
 0x151   :  { %v79_v44 = vadd.f32 %v78_v43, %v77_v42 }
 0x153   :  { %113 = vpush %v79_v44 }
 0x184   :  { %s114_s20 = spop %113 }
 0x185   :  { %v86_v46 = vstv %s114_s20 }
 0x186   :  { %v87_v48 = vsel %vm85_vm4, %v86_v46, 0.0 }
 0x187   :  { %v89_v49 = vsel %vm84_vm5, %v88_v47, %v87_v48 }
 0x188   :  { %v91_v50 = vsel %vm83_vm6, 8.0, %v89_v49 }
 0x189   :  { %92 = vst [vmem:[#allocation2] sm:$0xff] %v91_v50 }
 0x18a   :  { %103 = dma.vmem_to_hbm [thread:$0]  %s99_s19, 128, %s101_s23, [#allocation3]  }
 0x18b   :  { %143 = dma.done.wait [#allocation3], 128  }
 0x18c   :  { %144 = vsyncadd [#allocation3], 4294967168 }
 0x18d   :  { %108 = vsyncpa [#allocation3], 1 }

</bundles_post_ra>
